<compile_context>
chip_gen: v6e
topology: v6e:2x2x1
jax: 0.10.0
libtpu: 0.0.40
codegen_flags: <defaults>
</compile_context>

<pallas_src>
import math
from functools import partial

import numpy as np
import jax
import jax.numpy as jnp
from jax.experimental import pallas as pl
from jax.experimental.pallas import tpu as pltpu


def _round_up(x, m):
    return ((x + m - 1) // m) * m


def _cdiv(a, b):
    return -(-a // b)


def _default_bf16_relu():
    """bf16 VALU exists on v6e/v7x; keep f32 ReLU on v5e and older."""
    try:
        kind = jax.devices()[0].device_kind.lower()
    except Exception:
        return True
    for tag in ("v2", "v3", "v4", "v5"):
        if tag in kind:
            return False
    return True


def _choose_edge_tiling(E, block_edges):
    """Pick (TE, n_blocks, E_pad): TE multiple of 128, tight tail padding,
    and >= 2 blocks when possible (v7x megacore)."""
    block_edges = max(128, _round_up(int(block_edges), 128))
    E128 = _round_up(max(int(E), 1), 128)
    n_blocks = _cdiv(E128, block_edges)
    TE = _round_up(_cdiv(E128, n_blocks), 128)
    n_blocks = _cdiv(E128, TE)
    # Ensure >= 2 grid blocks when there is enough work, so the parallel edge
    # axis can be split across both TensorCores on v7x.
    if n_blocks == 1 and TE >= 256:
        TE = _round_up(_cdiv(TE, 2), 128)
        n_blocks = _cdiv(E128, TE)
    E_pad = n_blocks * TE
    return TE, n_blocks, E_pad


def _mlp_sat_kernel(x_ref, w1_ref, w2_ref, b2_ref, w3_ref, b3_ref,
                    w4_ref, b4_ref, out_ref, *, bf16_relu):
    # x_ref: [D+1, TE] bf16 (edges on the lane axis, last row == 1 for the
    # folded layer-1 bias).  Weights are torch-layout [out, in] (bf16), so each
    # layer is h' = W @ h (+ b).
    x = x_ref[...]                                                     # [D+1, TE]

    # Layer 1: bias folded into the contraction (ones row x extra W1 column).
    h = jnp.dot(w1_ref[...], x, preferred_element_type=jnp.float32)   # [256, TE]
    if bf16_relu:
        h = jnp.maximum(h.astype(jnp.bfloat16), 0)                    # bf16 ReLU
    else:
        h = jnp.maximum(h, 0.0).astype(jnp.bfloat16)                  # f32 ReLU (v5e)

    # Layer 2.
    h = jnp.dot(w2_ref[...], h, preferred_element_type=jnp.float32)   # [H, TE]
    h = h + b2_ref[...]
    if bf16_relu:
        h = jnp.maximum(h.astype(jnp.bfloat16), 0)
    else:
        h = jnp.maximum(h, 0.0).astype(jnp.bfloat16)

    # Layer 3 (kept in f32 after the matmul; only 20 rows).
    h = jnp.dot(w3_ref[...], h, preferred_element_type=jnp.float32)   # [20, TE]
    h = jnp.maximum(h + b3_ref[...], 0.0)

    # Layer 4 (20 -> 1): VPU multiply + cross-sublane (XLU) reduce, no N=1 MXU
    # matmul.  Output [1, TE] is lane-dense.
    out_ref[...] = jnp.sum(h * w4_ref[...], axis=0, keepdims=True) + b4_ref[...]


def build_edge_embeddings_T(l_embs_cat, c_embs_cat, lit_idx, cls_idx, E_pad):
    """Edge-embedding gather done directly in the kernel's [D+1, E_pad] bf16
    layout (no separate transpose/pad/cast pass over an [E, D] f32 buffer).
    The last row is all-ones for the folded layer-1 bias."""
    E = lit_idx.shape[0]
    lT = l_embs_cat.astype(jnp.bfloat16).T          # [3*emb_dim, n_lits]
    cT = c_embs_cat.astype(jnp.bfloat16).T          # [3*emb_dim, n_clauses]
    x_l = jnp.take(lT, lit_idx, axis=1)             # [3*emb_dim, E]
    x_c = jnp.take(cT, cls_idx, axis=1)             # [3*emb_dim, E]
    ones = jnp.ones((1, E), jnp.bfloat16)
    x = jnp.concatenate([x_l, x_c, ones], axis=0)   # [D+1, E]
    return jnp.pad(x, ((0, 0), (0, E_pad - E)))     # [D+1, E_pad]


def mlp_sat_forward(l_embs_cat, c_embs_cat, lit_idx, cls_idx, params,
                    inverse_indices, num_clauses, block_edges=4096,
                    bf16_relu=None):
    """MLP_SAT.forward: per-edge logits through the 4-layer MLP, then
    clause-mean pooling.  Returns [E] f32 clause-averaged logits w_ij.

    l_embs_cat: [n_lits, 3*emb_dim] f32     (concatenated literal snapshots)
    c_embs_cat: [n_clauses, 3*emb_dim] f32  (concatenated clause snapshots)
    lit_idx, cls_idx: [E] int32             (problem.batch_edges columns)
    params: [(W, b)] * 4, torch layout W:[out, in] f32, b:[out] f32
    """
    if bf16_relu is None:
        bf16_relu = _default_bf16_relu()

    (w1, b1), (w2, b2), (w3, b3), (w4, b4) = params
    E = int(lit_idx.shape[0])
    D = int(l_embs_cat.shape[1] + c_embs_cat.shape[1])          # 2 * 3 * emb_dim

    TE, n_blocks, E_pad = _choose_edge_tiling(E, block_edges)

    # Kernel input, built directly in [D+1, E_pad] bf16 (lane-dense edge axis).
    x = build_edge_embeddings_T(l_embs_cat, c_embs_cat, lit_idx, cls_idx, E_pad)

    # Layer-1 weight with the bias folded in as an extra column (K = D+1).
    w1b = jnp.concatenate([w1, b1.reshape(-1, 1)], axis=1).astype(jnp.bfloat16)
    w2b = w2.astype(jnp.bfloat16)
    w3b = w3.astype(jnp.bfloat16)
    b2c = b2.reshape(-1, 1).astype(jnp.float32)
    b3c = b3.reshape(-1, 1).astype(jnp.float32)
    w4c = w4.reshape(-1, 1).astype(jnp.float32)                 # [20, 1]
    b4c = b4.reshape(1, 1).astype(jnp.float32)                  # [1, 1]

    const = lambda i: (0, 0)                                    # VMEM-resident weights
    out = pl.pallas_call(
        partial(_mlp_sat_kernel, bf16_relu=bf16_relu),
        out_shape=jax.ShapeDtypeStruct((1, E_pad), jnp.float32),
        grid_spec=pltpu.PrefetchScalarGridSpec(
            num_scalar_prefetch=0,
            grid=(n_blocks,),
            in_specs=[
                pl.BlockSpec((D + 1, TE), lambda i: (0, i)),
                pl.BlockSpec(w1b.shape, const),
                pl.BlockSpec(w2b.shape, const), pl.BlockSpec(b2c.shape, const),
                pl.BlockSpec(w3b.shape, const), pl.BlockSpec(b3c.shape, const),
                pl.BlockSpec(w4c.shape, const), pl.BlockSpec(b4c.shape, const),
            ],
            out_specs=pl.BlockSpec((1, TE), lambda i: (0, i)),
        ),
        compiler_params=pltpu.CompilerParams(
            dimension_semantics=("parallel",)),
    )(x, w1b, w2b, b2c, w3b, b3c, w4c, b4c)

    w_edge = out[0, :E]                                         # padded lanes sliced off

    # Clause-mean pooling (every edge of a clause gets the clause-mean logit;
    # mean of one element == the element, matching the torch loop).  Left to
    # XLA: it is ~E*4 bytes of work and keeps the kernel edge axis parallel.
    seg_sum = jax.ops.segment_sum(w_edge, inverse_indices, num_segments=num_clauses)
    seg_cnt = jax.ops.segment_sum(jnp.ones_like(w_edge), inverse_indices,
                                  num_segments=num_clauses)
    clause_mean = seg_sum / seg_cnt
    return clause_mean[inverse_indices]


def _reference_forward(emb_cat, params, inverse_indices, num_clauses):
    """Pure-JAX reference mirroring the kernel's bf16/f32 precision choices."""
    (w1, b1), (w2, b2), (w3, b3), (w4, b4) = params
    h = emb_cat.astype(jnp.bfloat16)
    h = jnp.maximum(jnp.dot(h, w1.astype(jnp.bfloat16).T,
                            preferred_element_type=jnp.float32) + b1[None, :], 0.0)
    h = jnp.maximum(jnp.dot(h.astype(jnp.bfloat16), w2.astype(jnp.bfloat16).T,
                            preferred_element_type=jnp.float32) + b2[None, :], 0.0)
    h = jnp.maximum(jnp.dot(h.astype(jnp.bfloat16), w3.astype(jnp.bfloat16).T,
                            preferred_element_type=jnp.float32) + b3[None, :], 0.0)
    w = jnp.sum(h * w4[0][None, :], axis=-1) + b4[0]
    seg_sum = jax.ops.segment_sum(w, inverse_indices, num_segments=num_clauses)
    seg_cnt = jax.ops.segment_sum(jnp.ones_like(w), inverse_indices,
                                  num_segments=num_clauses)
    return (seg_sum / seg_cnt)[inverse_indices]


if __name__ == "__main__":
    key = jax.random.PRNGKey(0)
    emb_dim, hidden_dim = 32, 32              # small example dims
    in_size = 2 * emb_dim * 3                 # three_embs=True -> 2 * emb_dim * 3
    n_lits, n_clauses_total, n_edges = 12, 5, 14

    keys = jax.random.split(key, 9)

    # Three embedding snapshots (final + two intermediate NeuroSAT iterations),
    # concatenated along the feature axis as in getGraphEdgeEmbeddings.
    l_snaps = [jax.random.normal(keys[t], (n_lits, emb_dim), jnp.float32) for t in range(3)]
    c_snaps = [jax.random.normal(keys[3 + t], (n_clauses_total, emb_dim), jnp.float32)
               for t in range(3)]
    l_embs_cat = jnp.concatenate(l_snaps, axis=1)          # [n_lits, 3*emb_dim]
    c_embs_cat = jnp.concatenate(c_snaps, axis=1)          # [n_clauses, 3*emb_dim]

    # problem.batch_edges : [E, 2] = (literal index, clause index)
    lit_idx = jax.random.randint(keys[6], (n_edges,), 0, n_lits).astype(jnp.int32)
    cls_idx = jax.random.randint(keys[7], (n_edges,), 0, n_clauses_total).astype(jnp.int32)

    # torch.unique(batch_clauses, return_inverse=True) equivalent (host-side glue)
    batch_clauses = np.asarray(jax.device_get(cls_idx))
    clauses_np, inverse_np = np.unique(batch_clauses, return_inverse=True)
    clauses = jnp.asarray(clauses_np)
    inverse_indices = jnp.asarray(inverse_np.astype(np.int32))
    num_clauses = int(len(clauses_np))

    # Xavier-uniform weights (zero bias), complex_architecture=True, torch layout:
    # Linear(192,256) -> ReLU -> Linear(256,32) -> ReLU -> Linear(32,20) -> ReLU -> Linear(20,1)
    dims = [in_size, 256, hidden_dim, 20, 1]
    wkeys = jax.random.split(keys[8], 4)
    params = []
    for li in range(4):
        fan_in, fan_out = dims[li], dims[li + 1]
        limit = math.sqrt(6.0 / (fan_in + fan_out))
        W = jax.random.uniform(wkeys[li], (fan_out, fan_in), jnp.float32, -limit, limit)
        b = jnp.zeros((fan_out,), jnp.float32)
        params.append((W, b))

    w_ij = mlp_sat_forward(l_embs_cat, c_embs_cat, lit_idx, cls_idx, params,
                           inverse_indices, num_clauses)
    w_ij = jax.block_until_ready(w_ij)

    # sanity check vs a pure-JAX reference with matching precision
    emb_cat = jnp.concatenate([l_embs_cat[lit_idx], c_embs_cat[cls_idx]], axis=1)  # [E, 192]
    ref = _reference_forward(emb_cat, params, inverse_indices, num_clauses)
    np.testing.assert_allclose(np.asarray(w_ij), np.asarray(ref), rtol=2e-2, atol=5e-3)

    # forward() returns (w_ij, clauses, inverse_indices)
    _ = (w_ij, clauses, inverse_indices)
    print("KERNEL_OK")
</pallas_src>

<mosaic_0001>
module attributes {stable_mosaic.version = 11 : i64} {
  func.func @_mlp_sat_kernel(%arg0: i32, %arg1: memref<193x128xbf16, #tpu.memory_space<vmem>>, %arg2: memref<256x193xbf16, #tpu.memory_space<vmem>>, %arg3: memref<32x256xbf16, #tpu.memory_space<vmem>>, %arg4: memref<32x1xf32, #tpu.memory_space<vmem>>, %arg5: memref<20x32xbf16, #tpu.memory_space<vmem>>, %arg6: memref<20x1xf32, #tpu.memory_space<vmem>>, %arg7: memref<20x1xf32, #tpu.memory_space<vmem>>, %arg8: memref<1x1xf32, #tpu.memory_space<vmem>>, %arg9: memref<1x128xf32, #tpu.memory_space<vmem>>) attributes {dimension_semantics = [#tpu.dimension_semantics<parallel>], iteration_bounds = array<i64: 1>, scalar_prefetch = 0 : i64, scratch_operands = 0 : i64, tpu.core_type = #tpu.core_type<tc>, window_params = [{transform_indices = @transform_0, window_bounds = array<i64: 193, 128>}, {pipeline_mode = #tpu.pipeline_mode<synchronous>, transform_indices = @transform_1, window_bounds = array<i64: 256, 193>}, {pipeline_mode = #tpu.pipeline_mode<synchronous>, transform_indices = @transform_2, window_bounds = array<i64: 32, 256>}, {pipeline_mode = #tpu.pipeline_mode<synchronous>, transform_indices = @transform_3, window_bounds = array<i64: 32, 1>}, {pipeline_mode = #tpu.pipeline_mode<synchronous>, transform_indices = @transform_4, window_bounds = array<i64: 20, 32>}, {pipeline_mode = #tpu.pipeline_mode<synchronous>, transform_indices = @transform_5, window_bounds = array<i64: 20, 1>}, {pipeline_mode = #tpu.pipeline_mode<synchronous>, transform_indices = @transform_6, window_bounds = array<i64: 20, 1>}, {pipeline_mode = #tpu.pipeline_mode<synchronous>, transform_indices = @transform_7, window_bounds = array<i64: 1, 1>}, {transform_indices = @transform_8, window_bounds = array<i64: 1, 128>}]} {
    %c0 = arith.constant 0 : index
    %c0_0 = arith.constant 0 : index
    %0 = vector.load %arg1[%c0, %c0_0] : memref<193x128xbf16, #tpu.memory_space<vmem>>, vector<193x128xbf16>
    %c0_1 = arith.constant 0 : index
    %c0_2 = arith.constant 0 : index
    %1 = vector.load %arg2[%c0_1, %c0_2] : memref<256x193xbf16, #tpu.memory_space<vmem>>, vector<256x193xbf16>
    %cst = arith.constant dense<0.000000e+00> : vector<256x128xf32>
    %2 = tpu.matmul %1, %0, %cst {dimension_numbers = #tpu.dot_dimension_numbers<[1], [0], [0], [1], [0, 0, 1, 1], [], []>} : vector<256x193xbf16>, vector<193x128xbf16>, vector<256x128xf32> -> vector<256x128xf32>
    %3 = arith.truncf %2 : vector<256x128xf32> to vector<256x128xbf16>
    %cst_3 = arith.constant 0.000000e+00 : bf16
    %4 = vector.broadcast %cst_3 : bf16 to vector<256x128xbf16>
    %5 = arith.maximumf %3, %4 : vector<256x128xbf16>
    %c0_4 = arith.constant 0 : index
    %c0_5 = arith.constant 0 : index
    %6 = vector.load %arg3[%c0_4, %c0_5] : memref<32x256xbf16, #tpu.memory_space<vmem>>, vector<32x256xbf16>
    %cst_6 = arith.constant dense<0.000000e+00> : vector<32x128xf32>
    %7 = tpu.matmul %6, %5, %cst_6 {dimension_numbers = #tpu.dot_dimension_numbers<[1], [0], [0], [1], [0, 0, 1, 1], [], []>} : vector<32x256xbf16>, vector<256x128xbf16>, vector<32x128xf32> -> vector<32x128xf32>
    %c0_7 = arith.constant 0 : index
    %c0_8 = arith.constant 0 : index
    %8 = vector.load %arg4[%c0_7, %c0_8] : memref<32x1xf32, #tpu.memory_space<vmem>>, vector<32x1xf32>
    %9 = vector.broadcast %8 : vector<32x1xf32> to vector<32x128xf32>
    %10 = arith.addf %7, %9 : vector<32x128xf32>
    %11 = arith.truncf %10 : vector<32x128xf32> to vector<32x128xbf16>
    %cst_9 = arith.constant 0.000000e+00 : bf16
    %12 = vector.broadcast %cst_9 : bf16 to vector<32x128xbf16>
    %13 = arith.maximumf %11, %12 : vector<32x128xbf16>
    %c0_10 = arith.constant 0 : index
    %c0_11 = arith.constant 0 : index
    %14 = vector.load %arg5[%c0_10, %c0_11] : memref<20x32xbf16, #tpu.memory_space<vmem>>, vector<20x32xbf16>
    %cst_12 = arith.constant dense<0.000000e+00> : vector<20x128xf32>
    %15 = tpu.matmul %14, %13, %cst_12 {dimension_numbers = #tpu.dot_dimension_numbers<[1], [0], [0], [1], [0, 0, 1, 1], [], []>} : vector<20x32xbf16>, vector<32x128xbf16>, vector<20x128xf32> -> vector<20x128xf32>
    %c0_13 = arith.constant 0 : index
    %c0_14 = arith.constant 0 : index
    %16 = vector.load %arg6[%c0_13, %c0_14] : memref<20x1xf32, #tpu.memory_space<vmem>>, vector<20x1xf32>
    %17 = vector.broadcast %16 : vector<20x1xf32> to vector<20x128xf32>
    %18 = arith.addf %15, %17 : vector<20x128xf32>
    %cst_15 = arith.constant 0.000000e+00 : f32
    %19 = vector.broadcast %cst_15 : f32 to vector<20x128xf32>
    %20 = arith.maximumf %18, %19 : vector<20x128xf32>
    %c0_16 = arith.constant 0 : index
    %c0_17 = arith.constant 0 : index
    %21 = vector.load %arg7[%c0_16, %c0_17] : memref<20x1xf32, #tpu.memory_space<vmem>>, vector<20x1xf32>
    %22 = vector.broadcast %21 : vector<20x1xf32> to vector<20x128xf32>
    %23 = arith.mulf %20, %22 : vector<20x128xf32>
    %cst_18 = arith.constant dense<0.000000e+00> : vector<128xf32>
    %24 = vector.multi_reduction <add>, %23, %cst_18 [0] : vector<20x128xf32> to vector<128xf32>
    %25 = vector.shape_cast %24 : vector<128xf32> to vector<1x128xf32>
    %c0_19 = arith.constant 0 : index
    %c0_20 = arith.constant 0 : index
    %26 = vector.load %arg8[%c0_19, %c0_20] : memref<1x1xf32, #tpu.memory_space<vmem>>, vector<1x1xf32>
    %27 = vector.broadcast %26 : vector<1x1xf32> to vector<1x128xf32>
    %28 = arith.addf %25, %27 : vector<1x128xf32>
    %c0_21 = arith.constant 0 : index
    %c0_22 = arith.constant 0 : index
    %29 = vector.load %arg9[%c0_21, %c0_22] : memref<1x128xf32, #tpu.memory_space<vmem>>, vector<1x128xf32>
    tpu.vector_store %arg9[%c0_21, %c0_22], %28 {strides = array<i32>} : memref<1x128xf32, #tpu.memory_space<vmem>>, vector<1x128xf32>,
    return
  }
  func.func @transform_0(%arg0: i32) -> (i32, i32) {
    %c0_i32 = arith.constant 0 : i32
    %c0_i32_0 = arith.constant 0 : i32
    return %c0_i32, %arg0 : i32, i32
  }
  func.func @transform_1(%arg0: i32) -> (i32, i32) {
    %c0_i32 = arith.constant 0 : i32
    %c0_i32_0 = arith.constant 0 : i32
    %c0_i32_1 = arith.constant 0 : i32
    return %c0_i32, %c0_i32_0 : i32, i32
  }
  func.func @transform_2(%arg0: i32) -> (i32, i32) {
    %c0_i32 = arith.constant 0 : i32
    %c0_i32_0 = arith.constant 0 : i32
    %c0_i32_1 = arith.constant 0 : i32
    return %c0_i32, %c0_i32_0 : i32, i32
  }
  func.func @transform_3(%arg0: i32) -> (i32, i32) {
    %c0_i32 = arith.constant 0 : i32
    %c0_i32_0 = arith.constant 0 : i32
    %c0_i32_1 = arith.constant 0 : i32
    return %c0_i32, %c0_i32_0 : i32, i32
  }
  func.func @transform_4(%arg0: i32) -> (i32, i32) {
    %c0_i32 = arith.constant 0 : i32
    %c0_i32_0 = arith.constant 0 : i32
    %c0_i32_1 = arith.constant 0 : i32
    return %c0_i32, %c0_i32_0 : i32, i32
  }
  func.func @transform_5(%arg0: i32) -> (i32, i32) {
    %c0_i32 = arith.constant 0 : i32
    %c0_i32_0 = arith.constant 0 : i32
    %c0_i32_1 = arith.constant 0 : i32
    return %c0_i32, %c0_i32_0 : i32, i32
  }
  func.func @transform_6(%arg0: i32) -> (i32, i32) {
    %c0_i32 = arith.constant 0 : i32
    %c0_i32_0 = arith.constant 0 : i32
    %c0_i32_1 = arith.constant 0 : i32
    return %c0_i32, %c0_i32_0 : i32, i32
  }
  func.func @transform_7(%arg0: i32) -> (i32, i32) {
    %c0_i32 = arith.constant 0 : i32
    %c0_i32_0 = arith.constant 0 : i32
    %c0_i32_1 = arith.constant 0 : i32
    return %c0_i32, %c0_i32_0 : i32, i32
  }
  func.func @transform_8(%arg0: i32) -> (i32, i32) {
    %c0_i32 = arith.constant 0 : i32
    %c0_i32_0 = arith.constant 0 : i32
    return %c0_i32, %arg0 : i32, i32
  }
}

</mosaic_0001>

<bundles_post_ra>
// kernel: tpu_custom_call.1
= control target key start
LH: loop header
LB: loop body
LE: loop exit
PB: predicated region body
PF: predicated region fallthrough
CT: control target
= control target key end

     0   :  { %s1381_s0 = inlined_call_operand.vmem [shape: bf16[193,128], index: 0, kind: input, shape index: {}]   ;;  %s1382_s1 = inlined_call_operand.vmem [shape: bf16[256,193], index: 1, kind: input, shape index: {}]   ;;  %s1383_s2 = inlined_call_operand.vmem [shape: bf16[32,256], index: 2, kind: input, shape index: {}]   ;;  %s1384_s3 = inlined_call_operand.vmem [shape: f32[32,1], index: 3, kind: input, shape index: {}]   ;;  %s1385_s4 = inlined_call_operand.vmem [shape: bf16[20,32], index: 4, kind: input, shape index: {}]   ;;  %s1386_s5 = inlined_call_operand.vmem [shape: f32[20,1], index: 5, kind: input, shape index: {}]   ;;  %s1387_s6 = inlined_call_operand.vmem [shape: f32[20,1], index: 6, kind: input, shape index: {}]   ;;  %s1388_s7 = inlined_call_operand.<no memory space> [shape: f32[1,1], index: 7, kind: input, shape index: {}]   ;;  %s1389_s8 = inlined_call_operand.hbm [shape: f32[1,128], index: 8, kind: output, shape index: {}]  }
   0x1   :  { %v13_v0 = vstv %s1388_s7 }
   0x2   :  { %14 = vst [vmem:[#allocation2] sm:$0x1] %v13_v0 }
   0x3   :  { %v941_v1 = vld [vmem:[%s1381_s0 + $0x38] sm:$0xff]   ;;  %v1032_v2 = vmov 0   ;;  %v942_v3 = vld [vmem:[%s1381_s0 + $0x30] sm:$0xff]   ;;  %v943_v4 = vld [vmem:[%s1381_s0 + $0x28] sm:$0xff]   ;;  %vm309_vm0 = vcmask 531456   ;;  %vm358_vm1 = vcmask 1040384  }
   0x4   :  { %364 = vmatprep.subr.bf16.mxu0 %v1032_v2  ;;  %911 = vmatprep.subr.bf16.mxu1 %v1032_v2  ;;  %v944_v5 = vld [vmem:[%s1381_s0 + $0x20] sm:$0xff]   ;;  %v945_v7 = vld [vmem:[%s1381_s0 + $0x18] sm:$0xff]   ;;  %v946_v9 = vld [vmem:[%s1381_s0 + $0x10] sm:$0xff]   ;;  %v360_v13 = vsel %vm358_vm1, 65535, %v1032_v2 }
   0x5   :  { %365 = vmatpush1.bf16.msra.mxu0 %v941_v1  ;;  %924 = vmatpush1.bf16.msra.mxu1 %v941_v1  ;;  %v956_v6 = vld [vmem:[%s1382_s1 + $0x4] ss:$8 sps:$4 sm:$0xff]   ;;  %v949_v12 = vld [vmem:[%s1381_s0 + $0x60] ss:$0 sps:$4 sm:$0x11]   ;;  %v950_v15 = vld [vmem:[%s1381_s0 + $0x58] sm:$0xff]  }
   0x6   :  { %366 = vmatprep.subr.bf16.mxu0 %v1032_v2  ;;  %912 = vmatprep.subr.bf16.mxu1 %v1032_v2  ;;  %v962_v8 = vld [vmem:[%s1382_s1 + $0xa4] ss:$8 sps:$4 sm:$0xff]   ;;  %v362_v14 = vand.u32 %v949_v12, %v360_v13 }
   0x7   :  { %939 = vset.pattern.permute.xlu0 %v1032_v2  ;;  %940 = vset.pattern.permute.xlu1 %v1032_v2  ;;  %v947_v10 = vld [vmem:[%s1381_s0 + $0x8] sm:$0xff]   ;;  %v948_v11 = vld [vmem:[%s1381_s0] sm:$0xff]  }
   0x8   :  { %847 = vmatprep.mubr.msk.bf16.mxu0 %vm309_vm0, %v956_v6  ;;  %857 = vmatprep.mubr.msk.bf16.mxu1 %vm309_vm0, %v962_v8 }
   0x9   :  { %367 = vmatpush1.bf16.msra.mxu0 %v942_v3  ;;  %925 = vmatpush1.bf16.msra.mxu1 %v942_v3 }
   0xa   :  { %368 = vmatprep.subr.bf16.mxu0 %v1032_v2  ;;  %913 = vmatprep.subr.bf16.mxu1 %v1032_v2 }
   0xd   :  { %369 = vmatpush1.bf16.msra.mxu0 %v943_v4  ;;  %926 = vmatpush1.bf16.msra.mxu1 %v943_v4 }
   0xe   :  { %370 = vmatprep.subr.bf16.mxu0 %v1032_v2  ;;  %914 = vmatprep.subr.bf16.mxu1 %v1032_v2 }
  0x11   :  { %371 = vmatpush1.bf16.msra.mxu0 %v944_v5  ;;  %927 = vmatpush1.bf16.msra.mxu1 %v944_v5 }
  0x12   :  { %372 = vmatprep.subr.bf16.mxu0 %v1032_v2  ;;  %915 = vmatprep.subr.bf16.mxu1 %v1032_v2 }
  0x15   :  { %373 = vmatpush1.bf16.msra.mxu0 %v945_v7  ;;  %928 = vmatpush1.bf16.msra.mxu1 %v945_v7 }
  0x16   :  { %374 = vmatprep.subr.bf16.mxu0 %v1032_v2  ;;  %916 = vmatprep.subr.bf16.mxu1 %v1032_v2 }
  0x19   :  { %375 = vmatpush1.bf16.msra.mxu0 %v946_v9  ;;  %929 = vmatpush1.bf16.msra.mxu1 %v946_v9 }
  0x1a   :  { %376 = vmatprep.subr.bf16.mxu0 %v1032_v2  ;;  %917 = vmatprep.subr.bf16.mxu1 %v1032_v2 }
  0x1d   :  { %377 = vmatpush1.bf16.msra.mxu0 %v947_v10  ;;  %930 = vmatpush1.bf16.msra.mxu1 %v947_v10 }
  0x1e   :  { %378 = vmatprep.subr.bf16.mxu0 %v1032_v2  ;;  %918 = vmatprep.subr.bf16.mxu1 %v1032_v2 }
  0x21   :  { %379 = vmatpush1.bf16.msra.mxu0 %v948_v11  ;;  %931 = vmatpush1.bf16.msra.mxu1 %v948_v11 }
  0x22   :  { %386 = vmatprep.subr.bf16.mxu0 %v1032_v2  ;;  %919 = vmatprep.subr.bf16.mxu1 %v1032_v2 }
  0x25   :  { %387 = vmatpush2.bf16.msra.mxu0 %v362_v14  ;;  %932 = vmatpush2.bf16.msra.mxu1 %v362_v14 }
  0x26   :  { %388 = vmatprep.subr.bf16.mxu0 %v1032_v2  ;;  %920 = vmatprep.subr.bf16.mxu1 %v1032_v2 }
  0x27   :  { %15 = vsyncpa [#allocation4], 0  ;;  %v951_v16 = vld [vmem:[%s1381_s0 + $0x50] sm:$0xff]   ;;  %v952_v17 = vld [vmem:[%s1381_s0 + $0x48] sm:$0xff]   ;;  %vm687_vm2 = vcmask 261120   ;;  %vm767_vm3 = vcmask 1043456  }
  0x28   :  { %v953_v18 = vld [vmem:[%s1381_s0 + $0x40] sm:$0xff]   ;;  %v957_v21 = vld [vmem:[%s1382_s1 + $0x14] ss:$8 sps:$4 sm:$0xff]   ;;  %v959_v23 = vld [vmem:[%s1382_s1 + $0x10] ss:$8 sps:$4 sm:$0xff]  }
  0x29   :  { %389 = vmatpush2.bf16.msra.mxu0 %v950_v15  ;;  %933 = vmatpush2.bf16.msra.mxu1 %v950_v15  ;;  %v954_v19 = vld [vmem:[%s1382_s1] ss:$8 sps:$4 sm:$0xff]   ;;  %v966_v22 = vld [vmem:[%s1382_s1 + $0xb4] ss:$8 sps:$4 sm:$0xff]   ;;  %v968_v24 = vld [vmem:[%s1382_s1 + $0xb0] ss:$8 sps:$4 sm:$0xff]  }
  0x2a   :  { %390 = vmatprep.subr.bf16.mxu0 %v1032_v2  ;;  %921 = vmatprep.subr.bf16.mxu1 %v1032_v2  ;;  %v960_v20 = vld [vmem:[%s1382_s1 + $0xa0] ss:$8 sps:$4 sm:$0xff]   ;;  %v963_v25 = vld [vmem:[%s1382_s1 + $0x24] ss:$8 sps:$4 sm:$0xff]   ;;  %v969_v29 = vld [vmem:[%s1382_s1 + $0x34] ss:$8 sps:$4 sm:$0xff]  }
  0x2b   :  { %v972_v26 = vld [vmem:[%s1382_s1 + $0xc4] ss:$8 sps:$4 sm:$0xff]   ;;  %v965_v27 = vld [vmem:[%s1382_s1 + $0x20] ss:$8 sps:$4 sm:$0xff]   ;;  %v978_v30 = vld [vmem:[%s1382_s1 + $0xd4] ss:$8 sps:$4 sm:$0xff]  }
  0x2c   :  { %v974_v28 = vld [vmem:[%s1382_s1 + $0xc0] ss:$8 sps:$4 sm:$0xff]   ;;  %v971_v31 = vld [vmem:[%s1382_s1 + $0x30] ss:$8 sps:$4 sm:$0xff]   ;;  %v975_v33 = vld [vmem:[%s1382_s1 + $0x44] ss:$8 sps:$4 sm:$0xff]  }
  0x2d   :  { %391 = vmatpush2.bf16.msra.mxu0 %v951_v16  ;;  %934 = vmatpush2.bf16.msra.mxu1 %v951_v16  ;;  %v980_v32 = vld [vmem:[%s1382_s1 + $0xd0] ss:$8 sps:$4 sm:$0xff]   ;;  %v984_v34 = vld [vmem:[%s1382_s1 + $0xe4] ss:$8 sps:$4 sm:$0xff]   ;;  %v977_v35 = vld [vmem:[%s1382_s1 + $0x40] ss:$8 sps:$4 sm:$0xff]  }
  0x2e   :  { %392 = vmatprep.subr.bf16.mxu0 %v1032_v2  ;;  %922 = vmatprep.subr.bf16.mxu1 %v1032_v2  ;;  %v986_v36 = vld [vmem:[%s1382_s1 + $0xe0] ss:$8 sps:$4 sm:$0xff]   ;;  %v981_v37 = vld [vmem:[%s1382_s1 + $0x54] ss:$8 sps:$4 sm:$0xff]   ;;  %v983_v39 = vld [vmem:[%s1382_s1 + $0x50] ss:$8 sps:$4 sm:$0xff]  }
  0x2f   :  { %v990_v38 = vld [vmem:[%s1382_s1 + $0xf4] ss:$8 sps:$4 sm:$0xff]   ;;  %v992_v40 = vld [vmem:[%s1382_s1 + $0xf0] ss:$8 sps:$4 sm:$0xff]   ;;  %v987_v41 = vld [vmem:[%s1382_s1 + $0x64] ss:$8 sps:$4 sm:$0xff]  }
  0x30   :  { %v989_v42 = vld [vmem:[%s1382_s1 + $0x60] ss:$8 sps:$4 sm:$0xff]   ;;  %v993_v43 = vld [vmem:[%s1382_s1 + $0x74] ss:$8 sps:$4 sm:$0xff]   ;;  %v995_v44 = vld [vmem:[%s1382_s1 + $0x70] ss:$8 sps:$4 sm:$0xff]  }
  0x31   :  { %393 = vmatpush2.bf16.msra.mxu0 %v952_v17  ;;  %935 = vmatpush2.bf16.msra.mxu1 %v952_v17  ;;  %v996_v45 = vld [vmem:[%s1382_s1 + $0x84] ss:$8 sps:$4 sm:$0xff]   ;;  %v998_v46 = vld [vmem:[%s1382_s1 + $0x80] ss:$8 sps:$4 sm:$0xff]   ;;  %v999_v47 = vld [vmem:[%s1382_s1 + $0x94] ss:$8 sps:$4 sm:$0xff]  }
  0x32   :  { %394 = vmatprep.subr.bf16.mxu0 %v1032_v2  ;;  %923 = vmatprep.subr.bf16.mxu1 %v1032_v2  ;;  %v1001_v48 = vld [vmem:[%s1382_s1 + $0x90] ss:$8 sps:$4 sm:$0xff]   ;;  %v1004_v49 = vld [vmem:[%s1383_s2 + $0x4] ss:$8 sps:$4 sm:$0xff]   ;;  %v776_v60 = vld [vmem:[#allocation2] sm:$0x1] }
  0x33   :  { %v563_v50 = vld [vmem:[%s1384_s3 + $0x10] sm:$0xff]  ;;  %v561_v51 = vld [vmem:[%s1384_s3] sm:$0xff]  ;;  %v564_v52 = vld [vmem:[%s1384_s3 + $0x18] sm:$0xff] }
  0x34   :  { %577 = vperm.xlu0 %939, %v563_v50   ;;  %567 = vperm.xlu1 %940, %v561_v51   ;;  %v562_v53 = vld [vmem:[%s1384_s3 + $0x8] sm:$0xff]  ;;  %v661_v54 = vld [vmem:[%s1386_s5] sm:$0xff]  ;;  %v663_v56 = vld [vmem:[%s1386_s5 + $0x10] sm:$0xf] }
  0x35   :  { %395 = vmatpush2.bf16.msra.mxu0 %v953_v18  ;;  %936 = vmatpush2.bf16.msra.mxu1 %v953_v18  ;;  %v662_v55 = vld [vmem:[%s1386_s5 + $0x8] sm:$0xff]  ;;  %v745_v57 = vld [vmem:[%s1387_s6] sm:$0xff]  ;;  %v747_v59 = vld [vmem:[%s1387_s6 + $0x10] sm:$0xf] }
  0x36   :  { %v746_v58 = vld [vmem:[%s1387_s6 + $0x8] sm:$0xff] }
  0x38   :  { %397 = vmatmul.mubr.bf16.vlgmr.msra.gmra.mxu0 %v954_v19  ;;  %477 = vmatmul.mubr.bf16.vlgmr.msra.gmra.mxu1 %v960_v20 }
  0x39   :  { %848 = vmatprep.mubr.msk.bf16.mxu0 %vm309_vm0, %v957_v21  ;;  %858 = vmatprep.mubr.msk.bf16.mxu1 %vm309_vm0, %v966_v22 }
  0x3a   :  { %582 = vperm.xlu0 %939, %v564_v52   ;;  %572 = vperm.xlu1 %940, %v562_v53  }
  0x3e   :  { %666 = vperm.xlu0 %939, %v661_v54   ;;  %671 = vperm.xlu1 %940, %v662_v55  }
  0x40   :  { %405 = vmatmul.mubr.bf16.gmra.mxu0 %v959_v23  ;;  %485 = vmatmul.mubr.bf16.gmra.mxu1 %v968_v24 }
  0x41   :  { %849 = vmatprep.mubr.msk.bf16.mxu0 %vm309_vm0, %v963_v25  ;;  %859 = vmatprep.mubr.msk.bf16.mxu1 %vm309_vm0, %v972_v26 }
  0x42   :  { %676 = vperm.xlu0 %939, %v663_v56   ;;  %750 = vperm.xlu1 %940, %v745_v57  }
  0x46   :  { %755 = vperm.xlu0 %939, %v746_v58   ;;  %760 = vperm.xlu1 %940, %v747_v59  }
  0x48   :  { %413 = vmatmul.mubr.bf16.gmra.mxu0 %v965_v27  ;;  %493 = vmatmul.mubr.bf16.gmra.mxu1 %v974_v28 }
  0x49   :  { %850 = vmatprep.mubr.msk.bf16.mxu0 %vm309_vm0, %v969_v29  ;;  %860 = vmatprep.mubr.msk.bf16.mxu1 %vm309_vm0, %v978_v30 }
  0x4a   :  { %779 = vperm.xlu0 %939, %v776_v60  }
  0x50   :  { %421 = vmatmul.mubr.bf16.gmra.mxu0 %v971_v31  ;;  %501 = vmatmul.mubr.bf16.gmra.mxu1 %v980_v32 }
  0x51   :  { %851 = vmatprep.mubr.msk.bf16.mxu0 %vm309_vm0, %v975_v33  ;;  %861 = vmatprep.mubr.msk.bf16.mxu1 %vm309_vm0, %v984_v34 }
  0x58   :  { %429 = vmatmul.mubr.bf16.gmra.mxu0 %v977_v35  ;;  %509 = vmatmul.mubr.bf16.gmra.mxu1 %v986_v36 }
  0x59   :  { %852 = vmatprep.mubr.msk.bf16.mxu0 %vm309_vm0, %v981_v37  ;;  %862 = vmatprep.mubr.msk.bf16.mxu1 %vm309_vm0, %v990_v38 }
  0x60   :  { %437 = vmatmul.mubr.bf16.gmra.mxu0 %v983_v39  ;;  %517 = vmatmul.mubr.bf16.gmra.mxu1 %v992_v40 }
  0x61   :  { %853 = vmatprep.mubr.msk.bf16.mxu0 %vm309_vm0, %v987_v41  ;;  %637 = vmatprep.mubr.bf16.mxu1 %v1004_v49 }
  0x68   :  { %445 = vmatmul.mubr.bf16.gmra.mxu0 %v989_v42 }
  0x69   :  { %854 = vmatprep.mubr.msk.bf16.mxu0 %vm309_vm0, %v993_v43 }
  0x70   :  { %453 = vmatmul.mubr.bf16.gmra.mxu0 %v995_v44 }
  0x71   :  { %855 = vmatprep.mubr.msk.bf16.mxu0 %vm309_vm0, %v996_v45 }
  0x78   :  { %461 = vmatmul.mubr.bf16.gmra.mxu0 %v998_v46 }
  0x79   :  { %856 = vmatprep.mubr.msk.bf16.mxu0 %vm309_vm0, %v999_v47 }
  0x80   :  { %469 = vmatmul.mubr.bf16.gmra.mxu0 %v1001_v48 }
  0xf8   :  { %v1295_v61 = vpop.f32.mrf.mxu0  ;;  %v1297_v62 = vpop.f32.mrf.mxu1 }
  0xfa   :  { %v400_v63 = vpop.f32.mrf.mxu0  ;;  %v480_v0 = vpop.f32.mrf.mxu1 }
  0xfc   :  { %v1299_v1 = vpop.f32.mrf.mxu0  ;;  %v1301_v3 = vpop.f32.mrf.mxu1 }
  0xfd   :  { %v525_v4 = vpack.c.bf16 %v1299_v1, %v1295_v61  ;;  %v535_v5 = vpack.c.bf16 %v1301_v3, %v1297_v62  ;;  %v1002_v3 = vld [vmem:[%s1383_s2] ss:$8 sps:$4 sm:$0xff]  }
  0xfe   :  { %v403_v6 = vpop.f32.mrf.mxu0  ;;  %v483_v7 = vpop.f32.mrf.mxu1  ;;  %v1008_v61 = vld [vmem:[%s1385_s4] sm:$0xff]  }
  0xff   :  { %v541_v62 = vmax.bf16 %v1032_v2, %v525_v4 }
 0x100   :  { %v1307_v8 = vpop.f32.mrf.mxu0  ;;  %v1309_v9 = vpop.f32.mrf.mxu1 }
 0x102   :  { %v408_v10 = vpop.f32.mrf.mxu0  ;;  %v488_v11 = vpop.f32.mrf.mxu1 }
 0x104   :  { %v1311_v12 = vpop.f32.mrf.mxu0  ;;  %v1313_v13 = vpop.f32.mrf.mxu1 }
 0x105   :  { %v526_v14 = vpack.c.bf16 %v1311_v12, %v1307_v8  ;;  %v1007_v8 = vld [vmem:[%s1383_s2 + $0x10] ss:$8 sps:$4 sm:$0xff]  }
 0x106   :  { %v411_v15 = vpop.f32.mrf.mxu0  ;;  %v491_v16 = vpop.f32.mrf.mxu1 }
 0x108   :  { %v1317_v17 = vpop.f32.mrf.mxu0  ;;  %v1319_v18 = vpop.f32.mrf.mxu1 }
 0x10a   :  { %v416_v19 = vpop.f32.mrf.mxu0  ;;  %v496_v20 = vpop.f32.mrf.mxu1 }
 0x10c   :  { %v1321_v21 = vpop.f32.mrf.mxu0  ;;  %v497_v22 = vpop.f32.mrf.mxu1 }
 0x10d   :  { %v537_v19 = vpack.c.bf16 %v497_v22, %v1319_v18 }
 0x10e   :  { %v419_v23 = vpop.f32.mrf.mxu0  ;;  %v499_v24 = vpop.f32.mrf.mxu1 }
 0x110   :  { %v1323_v25 = vpop.f32.mrf.mxu0  ;;  %v502_v26 = vpop.f32.mrf.mxu1 }
 0x112   :  { %v424_v27 = vpop.f32.mrf.mxu0  ;;  %v504_v28 = vpop.f32.mrf.mxu1 }
 0x113   :  { %v536_v28 = vpack.c.bf16 %v1313_v13, %v1309_v9  ;;  %v527_v9 = vpack.c.bf16 %v1321_v21, %v1317_v17  ;;  %v542_v17 = vmax.bf16 %v1032_v2, %v526_v14 }
 0x114   :  { %v1325_v29 = vpop.f32.mrf.mxu0  ;;  %v505_v30 = vpop.f32.mrf.mxu1 }
 0x115   :  { %v538_v6 = vpack.c.bf16 %v505_v30, %v502_v26  ;;  %v553_v30 = vmax.bf16 %v1032_v2, %v537_v19  ;;  %v528_v18 = vpack.c.bf16 %v1325_v29, %v1323_v25  ;;  %v543_v25 = vmax.bf16 %v1032_v2, %v527_v9 }
 0x116   :  { %v427_v31 = vpop.f32.mrf.mxu0  ;;  %v507_v32 = vpop.f32.mrf.mxu1 }
 0x117   :  { %v554_v20 = vmax.bf16 %v1032_v2, %v538_v6  ;;  %v544_v13 = vmax.bf16 %v1032_v2, %v528_v18 }
 0x118   :  { %v430_v33 = vpop.f32.mrf.mxu0  ;;  %v510_v34 = vpop.f32.mrf.mxu1 }
 0x11a   :  { %v432_v35 = vpop.f32.mrf.mxu0  ;;  %v512_v36 = vpop.f32.mrf.mxu1 }
 0x11b   :  { %v551_v36 = vmax.bf16 %v1032_v2, %v535_v5  ;;  %v1005_v5 = vld [vmem:[%s1383_s2 + $0x14] ss:$8 sps:$4 sm:$0xff]  }
 0x11c   :  { %v433_v37 = vpop.f32.mrf.mxu0  ;;  %v513_v38 = vpop.f32.mrf.mxu1 }
 0x11d   :  { %v539_v57 = vpack.c.bf16 %v513_v38, %v510_v34  ;;  %v529_v27 = vpack.c.bf16 %v433_v37, %v430_v33  ;;  %v552_v34 = vmax.bf16 %v1032_v2, %v536_v28 }
 0x11e   :  { %v435_v39 = vpop.f32.mrf.mxu0  ;;  %v515_v40 = vpop.f32.mrf.mxu1 }
 0x11f   :  { %v555_v7 = vmax.bf16 %v1032_v2, %v539_v57  ;;  %v545_v22 = vmax.bf16 %v1032_v2, %v529_v27  ;;  %v568_v39 = vpop.permute.xlu1 %567 }
 0x120   :  { %v438_v41 = vpop.f32.mrf.mxu0  ;;  %v518_v42 = vpop.f32.mrf.mxu1 }
 0x122   :  { %v440_v43 = vpop.f32.mrf.mxu0  ;;  %v520_v44 = vpop.f32.mrf.mxu1 }
 0x124   :  { %v441_v45 = vpop.f32.mrf.mxu0  ;;  %v521_v46 = vpop.f32.mrf.mxu1 }
 0x125   :  { %v540_v47 = vpack.c.bf16 %v521_v46, %v518_v42  ;;  %v530_v15 = vpack.c.bf16 %v441_v45, %v438_v41  ;;  %v578_v41 = vpop.permute.xlu0 %577 }
 0x126   :  { %v443_v48 = vpop.f32.mrf.mxu0  ;;  %v523_v49 = vpop.f32.mrf.mxu1 }
 0x127   :  { %v556_v50 = vmax.bf16 %v1032_v2, %v540_v47  ;;  %v546_v26 = vmax.bf16 %v1032_v2, %v530_v15  ;;  %v573_v47 = vpop.permute.xlu1 %572 }
 0x128   :  { %v446_v51 = vpop.f32.mrf.mxu0 }
 0x129   :  { %871 = vmatprep.subr.bf16.mxu1 %v556_v50 }
 0x12a   :  { %v448_v52 = vpop.f32.mrf.mxu0 }
 0x12c   :  { %v449_v53 = vpop.f32.mrf.mxu0 }
 0x12d   :  { %v531_v63 = vpack.c.bf16 %v449_v53, %v446_v51  ;;  %v583_v51 = vpop.permute.xlu0 %582 }
 0x12e   :  { %v451_v54 = vpop.f32.mrf.mxu0 }
 0x12f   :  { %v547_v16 = vmax.bf16 %v1032_v2, %v531_v63  ;;  %v672_v63 = vpop.permute.xlu1 %671 }
 0x130   :  { %v454_v55 = vpop.f32.mrf.mxu0 }
 0x132   :  { %v456_v56 = vpop.f32.mrf.mxu0 }
 0x134   :  { %v457_v58 = vpop.f32.mrf.mxu0 }
 0x135   :  { %v532_v59 = vpack.c.bf16 %v457_v58, %v454_v55 }
 0x136   :  { %v459_v60 = vpop.f32.mrf.mxu0 }
 0x137   :  { %v548_v0 = vmax.bf16 %v1032_v2, %v532_v59  ;;  %v1009_v59 = vld [vmem:[%s1385_s4 + $0x8] ss:$0 sps:$4 sm:$0x33]   ;;  %v667_v60 = vpop.permute.xlu0 %666  ;;  %s1033_s4 = smov [#allocation3]  }
 0x138   :  { %v462_v10 = vpop.f32.mrf.mxu0  ;;  %s794_s27 = sshll.u32 %s1033_s4, 4  ;;  %s795_s27 = int_to_ptr.vmem [resolvable:$true] %s794_s27 }
 0x139   :  { %872 = vmatpush3.bf16.msra.mxu1 %v548_v0  ;;  %s1010_s28 = scalar_lea.vmem %s795_s27, 16  ;;  %s1014_s29 = scalar_lea.vmem %s795_s27, 32 }
 0x13a   :  { %873 = vmatprep.subr.bf16.mxu1 %v555_v7  ;;  %v464_v11 = vpop.f32.mrf.mxu0  ;;  %p1011_p0 = scmp.ne.s32.totalorder %s795_s27, %s1010_s28  ;;  %p1015_p1 = scmp.lt.s32.totalorder %s795_s27, %s795_s27 }
 0x13b   :  { %v677_v6 = vpop.permute.xlu0 %676  ;;  %v751_v11 = vpop.permute.xlu1 %750  ;;  %p1016_p2 = scmp.lt.s32.totalorder %s1014_s29, %s1010_s28 }
 0x13c   :  { %v465_v23 = vpop.f32.mrf.mxu0 }
 0x13d   :  { %874 = vmatpush3.bf16.msra.mxu1 %v547_v16  ;;  %v533_v29 = vpack.c.bf16 %v465_v23, %v462_v10  ;;  %p1017_p3 = por %p1016_p2, %p1015_p1 }
 0x13e   :  { %875 = vmatprep.subr.bf16.mxu1 %v554_v20  ;;  %v467_v24 = vpop.f32.mrf.mxu0 }
 0x13f   :  { %v549_v21 = vmax.bf16 %v1032_v2, %v533_v29  ;;  %v761_v24 = vpop.permute.xlu1 %760  ;;  %p1018_p4 = pnand %p1017_p3, %p1011_p0 }
 0x140   :  { %v470_v31 = vpop.f32.mrf.mxu0 }
 0x141   :  { %876 = vmatpush3.bf16.msra.mxu1 %v546_v26  ;;  %v756_v26 = vpop.permute.xlu0 %755 }
 0x142   :  { %877 = vmatprep.subr.bf16.mxu1 %v553_v30  ;;  %v472_v32 = vpop.f32.mrf.mxu0 }
 0x144   :  { %v473_v35 = vpop.f32.mrf.mxu0 }
 0x145   :  { %878 = vmatpush3.bf16.msra.mxu1 %v545_v22  ;;  %v534_v37 = vpack.c.bf16 %v473_v35, %v470_v31  ;;  %v782_v22 = vlaneseq }
 0x146   :  { %879 = vmatprep.subr.bf16.mxu1 %v552_v34  ;;  %v475_v33 = vpop.f32.mrf.mxu0 }
 0x147   :  { %v550_v38 = vmax.bf16 %v1032_v2, %v534_v37  ;;  %v783_v33 = vshrl.u32 %v782_v22, 7 }
 0x149   :  { %880 = vmatpush3.bf16.msra.mxu1 %v544_v13 }
 0x14a   :  { %881 = vmatprep.subr.bf16.mxu1 %v551_v36  ;;  %v784_v36 = vsub.s32 0, %v783_v33 }
 0x14d   :  { %882 = vmatpush3.bf16.msra.mxu1 %v543_v25  ;;  %v780_v25 = vpop.permute.xlu0 %779 }
 0x14e   :  { %883 = vmatprep.subr.bf16.mxu1 %v550_v38  ;;  %v785_v38 = vrot.slane %v780_v25, %v784_v36 }
 0x151   :  { %884 = vmatpush3.bf16.msra.mxu1 %v542_v17 }
 0x152   :  { %885 = vmatprep.subr.bf16.mxu1 %v549_v21 }
 0x155   :  { %886 = vmatpush3.bf16.msra.mxu1 %v541_v62 }
 0x158   :  { %638 = vmatmul.mubr.bf16.vlgmr.msra.gmra.mxu1 %v1002_v3 }
 0x159   :  { %645 = vmatprep.mubr.bf16.mxu1 %v1005_v5 }
 0x160   :  { %646 = vmatmul.mubr.bf16.gmra.mxu1 %v1007_v8 }
 0x161   :  { %907 = vmatprep.mubr.msk.bf16.mxu1 %vm687_vm2, %v1008_v61 }
 0x218   :  { %v887_v1 = vpop.f32.mrf.mxu1 }
 0x21a   :  { %v888_v4 = vpop.f32.mrf.mxu1 }
 0x21b   :  { %v889_v45 = vadd.f32 %v888_v4, %v887_v1 }
 0x21c   :  { %v890_v12 = vpop.f32.mrf.mxu1 }
 0x21d   :  { %v640_v52 = vadd.f32 %v889_v45, %v568_v39 }
 0x21e   :  { %v891_v14 = vpop.f32.mrf.mxu1 }
 0x21f   :  { %v892_v43 = vadd.f32 %v891_v14, %v890_v12 }
 0x220   :  { %v893_v40 = vpop.f32.mrf.mxu1 }
 0x221   :  { %v643_v49 = vadd.f32 %v892_v43, %v573_v47 }
 0x222   :  { %v894_v42 = vpop.f32.mrf.mxu1 }
 0x223   :  { %v895_v46 = vadd.f32 %v894_v42, %v893_v40  ;;  %v654_v55 = vpack.c.bf16 %v643_v49, %v640_v52 }
 0x224   :  { %v896_v44 = vpop.f32.mrf.mxu1 }
 0x225   :  { %v648_v53 = vadd.f32 %v895_v46, %v578_v41  ;;  %v656_v58 = vmax.bf16 %v1032_v2, %v654_v55 }
 0x226   :  { %v897_v48 = vpop.f32.mrf.mxu1 }
 0x227   :  { %v898_v50 = vadd.f32 %v897_v48, %v896_v44 }
 0x229   :  { %v651_v54 = vadd.f32 %v898_v50, %v583_v51 }
 0x22b   :  { %v655_v56 = vpack.c.bf16 %v651_v54, %v648_v53 }
 0x22d   :  { %v657_v57 = vmax.bf16 %v1032_v2, %v655_v56 }
 0x22f   :  { %903 = vmatprep.subr.bf16.mxu1 %v657_v57 }
 0x230   :  { %904 = vmatpush3.bf16.msra.mxu1 %v657_v57 }
 0x231   :  { %905 = vmatprep.subr.bf16.mxu1 %v656_v58 }
 0x234   :  { %906 = vmatpush3.bf16.msra.mxu1 %v656_v58 }
 0x237   :  { %908 = vmatmul.mubr.msk.bf16.vlgmr.msra.gmra.mxu1 %vm687_vm2, %v1009_v59 }
 0x2f7   :  { %v909_v0 = vpop.f32.mrf.mxu1 }
 0x2f8   :  { %v737_v7 = vadd.f32 %v909_v0, %v677_v6 }
 0x2f9   :  { %v728_v10 = vpop.f32.mrf.mxu1 }
 0x2fa   :  { %v729_v15 = vadd.f32 %v728_v10, %v667_v60  ;;  %v744_v19 = vmax.f32 %v737_v7, 0.0 }
 0x2fb   :  { %v910_v16 = vpop.f32.mrf.mxu1 }
 0x2fc   :  { %v742_v20 = vmax.f32 %v729_v15, 0.0  ;;  %v765_v28 = vmul.f32 %v761_v24, %v744_v19 }
 0x2fd   :  { %v731_v2 = vpop.f32.mrf.mxu1 }
 0x2fe   :  { %v732_v23 = vadd.f32 %v731_v2, %v672_v63  ;;  %v763_v30 = vmul.f32 %v751_v11, %v742_v20  ;;  %v768_v18 = vsel %vm767_vm3, %v765_v28, 0.0 }
 0x300   :  { %v743_v27 = vmax.f32 %v732_v23, 0.0 }
 0x302   :  { %v764_v31 = vmul.f32 %v756_v26, %v743_v27 }
 0x304   :  { %v766_v32 = vadd.f32 %v764_v31, %v763_v30 }
 0x306   :  { %v769_v34 = vadd.f32 %v768_v18, %v766_v32 }
 0x308   :  { %v770_v35 = vrot.slane %v769_v34, 4 }
 0x30a   :  { %v771_v9 = vadd.f32 %v770_v35, %v769_v34 }
 0x30c   :  { %v772_v13 = vrot.slane %v771_v9, 2 }
 0x30e   :  { %v773_v37 = vadd.f32 %v772_v13, %v771_v9 }
 0x310   :  { %v774_v29 = vrot.slane %v773_v37, 1 }
 0x312   :  { %v775_v17 = vadd.f32 %v774_v29, %v773_v37 }
 0x314   :  { %v786_v21 = vadd.f32 %v785_v38, %v775_v17 }
 0x316   :  { %787 = vst [vmem:[#allocation3] sm:$0x1] %v786_v21 }
 0x317   :  { %1021 = shalt.err (!%p1018_p4)
}
 0x318   :  { %797 = dma.vmem_to_hbm [thread:$0]  %s795_s27, 16, %s1389_s8, [#allocation4]  }
 0x319   :  { %1030 = dma.done.wait [#allocation4], 16  }
 0x31a   :  { %1031 = vsyncadd [#allocation4], 4294967280 }
 0x31b   :  { %801 = vsyncpa [#allocation4], 1 }

</bundles_post_ra>
